<compile_context>
chip_gen: v6e
topology: v6e:2x2x1
jax: 0.10.0
libtpu: 0.0.40
codegen_flags: <defaults>
</compile_context>

<pallas_src>
import functools

import jax
import jax.numpy as jnp
from jax.experimental import pallas as pl
from jax.experimental.pallas import tpu as pltpu

IN_DIM = 784   # feature dim (matches nn.Linear(784, ...))
HID = 128


def _round_up(x, m):
    return (x + m - 1) // m * m


def _ae_kernel(x_ref,
               w1_ref, b1_ref,
               w2_ref, b2_ref,
               w3_ref, b3_ref,
               w4_ref, b4_ref,
               o_ref):
    """Fused 4-layer MLP (Linear + ReLU x4) on one batch tile.

    x is loaded f32 and cast to bf16 in-register; weights are bf16 residents
    in VMEM; every matmul accumulates in f32 on the MXU; biases stay f32.
    """
    x = x_ref[...].astype(jnp.bfloat16)            # (tb, 784)

    # Encoder layer 1: 784 -> 128
    h = jnp.dot(x, w1_ref[...], preferred_element_type=jnp.float32) + b1_ref[...]
    h = jnp.maximum(h, 0.0).astype(jnp.bfloat16)

    # Encoder layer 2: 128 -> 128
    h = jnp.dot(h, w2_ref[...], preferred_element_type=jnp.float32) + b2_ref[...]
    h = jnp.maximum(h, 0.0).astype(jnp.bfloat16)

    # Decoder layer 1: 128 -> 128
    h = jnp.dot(h, w3_ref[...], preferred_element_type=jnp.float32) + b3_ref[...]
    h = jnp.maximum(h, 0.0).astype(jnp.bfloat16)

    # Decoder layer 2: 128 -> 784
    h = jnp.dot(h, w4_ref[...], preferred_element_type=jnp.float32) + b4_ref[...]
    h = jnp.maximum(h, 0.0)

    o_ref[...] = h.astype(o_ref.dtype)


def pack_params(params):
    """One-time prepack: weights -> bf16, biases -> f32. Do this outside the
    hot path so ae_forward never re-casts weights per call."""
    return tuple((w.astype(jnp.bfloat16), b.astype(jnp.float32))
                 for (w, b) in params)


@functools.partial(jax.jit, static_argnames=("tb", "out_dtype"))
def ae_forward(x, packed_params, *, tb=1024, out_dtype=jnp.bfloat16):
    """Fused AE forward. x: (B, 784) float32. Returns (B, 784) out_dtype."""
    B, D = x.shape
    assert D == IN_DIM

    (w1, b1), (w2, b2), (w3, b3), (w4, b4) = packed_params
    # No-ops if params were pre-packed with pack_params (XLA elides them).
    w1, w2, w3, w4 = (w.astype(jnp.bfloat16) for w in (w1, w2, w3, w4))

    # --- batch tile: multiple of 8, <= tb; cap near B/2 so grid >= 2 and both
    # v7x TensorCores get work (free on single-TC v5e/v6e). -------------------
    cap = max(8, (B // 2) // 8 * 8) if B >= 16 else 8
    tb_eff = max(8, min(tb, cap))
    b_pad = _round_up(B, tb_eff)
    grid = b_pad // tb_eff

    # Row-pad only if the batch doesn't divide the tile (no feature padding,
    # no dtype-cast pass over x).
    xp = x if b_pad == B else jnp.pad(x, ((0, b_pad - B), (0, 0)))

    def full_spec(arr):
        # Whole (small) operand resident in VMEM; constant block index so
        # Mosaic does not re-fetch it across grid steps.
        return pl.BlockSpec(arr.shape, lambda i: (0,) * arr.ndim)

    grid_spec = pltpu.PrefetchScalarGridSpec(
        num_scalar_prefetch=0,
        grid=(grid,),
        in_specs=[
            pl.BlockSpec((tb_eff, IN_DIM), lambda i: (i, 0)),   # x tile (f32)
            full_spec(w1), full_spec(b1),
            full_spec(w2), full_spec(b2),
            full_spec(w3), full_spec(b3),
            full_spec(w4), full_spec(b4),
        ],
        out_specs=pl.BlockSpec((tb_eff, IN_DIM), lambda i: (i, 0)),
    )

    out = pl.pallas_call(
        _ae_kernel,
        out_shape=jax.ShapeDtypeStruct((b_pad, IN_DIM), out_dtype),
        grid_spec=grid_spec,
        compiler_params=pltpu.CompilerParams(
            dimension_semantics=("parallel",),
            vmem_limit_bytes=40 << 20,
        ),
    )(xp, w1, b1, w2, b2, w3, b3, w4, b4)

    # Only the (rare) row padding is sliced off; no column slice pass.
    return out if b_pad == B else out[:B]


def init_params(key):
    """Deterministic init mimicking nn.Linear's U(-1/sqrt(fan_in), 1/sqrt(fan_in))."""
    def linear(k, fan_in, fan_out):
        kw, kb = jax.random.split(k)
        bound = 1.0 / jnp.sqrt(fan_in)
        w = jax.random.uniform(kw, (fan_in, fan_out), jnp.float32, -bound, bound)
        b = jax.random.uniform(kb, (1, fan_out), jnp.float32, -bound, bound)
        return w, b

    k1, k2, k3, k4 = jax.random.split(key, 4)
    return (
        linear(k1, IN_DIM, HID),   # encoder_layer1
        linear(k2, HID, HID),      # encoder_layer2
        linear(k3, HID, HID),      # decoder_layer1
        linear(k4, HID, IN_DIM),   # decoder_layer2
    )


def ae_forward_ref(x, params, stream_dtype=jnp.float32):
    """Plain-JAX reference. With stream_dtype=bf16 it mirrors the kernel's
    mixed precision (bf16 operands, f32 accumulation / bias / relu)."""
    h = x.astype(stream_dtype)
    for idx, (w, b) in enumerate(params):
        h = jnp.dot(h, w.astype(stream_dtype),
                    preferred_element_type=jnp.float32) + b.astype(jnp.float32)
        h = jnp.maximum(h, 0.0)
        if idx < len(params) - 1:
            h = h.astype(stream_dtype)
    return h


if __name__ == "__main__":
    key = jax.random.PRNGKey(0)
    k_params, k_x = jax.random.split(key)

    params = init_params(k_params)
    packed = pack_params(params)            # one-time bf16 weight prepack

    B = 32                                   # small demo batch
    x = jax.random.normal(k_x, (B, IN_DIM), jnp.float32)

    out = ae_forward(x, packed)              # default tb=1024, bf16 output
    out = jax.block_until_ready(out)
    assert out.shape == (B, IN_DIM)

    out_f32 = out.astype(jnp.float32)

    # Matched-precision reference (bf16 streaming, f32 accumulation, bf16 out).
    ref_bf16 = ae_forward_ref(x, params, stream_dtype=jnp.bfloat16)
    ref_bf16_q = ref_bf16.astype(jnp.bfloat16).astype(jnp.float32)
    assert jnp.allclose(out_f32, ref_bf16_q, atol=2e-2, rtol=2e-2), \
        "mismatch vs matched-precision reference"

    # Loose sanity check against the pure-f32 reference (bf16 rounding only).
    ref_f32 = ae_forward_ref(x, params, stream_dtype=jnp.float32)
    assert jnp.allclose(out_f32, ref_f32, atol=0.5, rtol=0.1), \
        "mismatch vs f32 reference beyond bf16 tolerance"

    print("KERNEL_OK")
</pallas_src>

<mosaic_0001>
module attributes {stable_mosaic.version = 11 : i64} {
  func.func @_ae_kernel(%arg0: i32, %arg1: memref<16x784xf32, #tpu.memory_space<vmem>>, %arg2: memref<784x128xbf16, #tpu.memory_space<vmem>>, %arg3: memref<1x128xf32, #tpu.memory_space<vmem>>, %arg4: memref<128x128xbf16, #tpu.memory_space<vmem>>, %arg5: memref<1x128xf32, #tpu.memory_space<vmem>>, %arg6: memref<128x128xbf16, #tpu.memory_space<vmem>>, %arg7: memref<1x128xf32, #tpu.memory_space<vmem>>, %arg8: memref<128x784xbf16, #tpu.memory_space<vmem>>, %arg9: memref<1x784xf32, #tpu.memory_space<vmem>>, %arg10: memref<16x784xbf16, #tpu.memory_space<vmem>>) attributes {dimension_semantics = [#tpu.dimension_semantics<parallel>], iteration_bounds = array<i64: 2>, scalar_prefetch = 0 : i64, scratch_operands = 0 : i64, tpu.core_type = #tpu.core_type<tc>, window_params = [{transform_indices = @transform_0, window_bounds = array<i64: 16, 784>}, {pipeline_mode = #tpu.pipeline_mode<synchronous>, transform_indices = @transform_1, window_bounds = array<i64: 784, 128>}, {pipeline_mode = #tpu.pipeline_mode<synchronous>, transform_indices = @transform_2, window_bounds = array<i64: 1, 128>}, {pipeline_mode = #tpu.pipeline_mode<synchronous>, transform_indices = @transform_3, window_bounds = array<i64: 128, 128>}, {pipeline_mode = #tpu.pipeline_mode<synchronous>, transform_indices = @transform_4, window_bounds = array<i64: 1, 128>}, {pipeline_mode = #tpu.pipeline_mode<synchronous>, transform_indices = @transform_5, window_bounds = array<i64: 128, 128>}, {pipeline_mode = #tpu.pipeline_mode<synchronous>, transform_indices = @transform_6, window_bounds = array<i64: 1, 128>}, {pipeline_mode = #tpu.pipeline_mode<synchronous>, transform_indices = @transform_7, window_bounds = array<i64: 128, 784>}, {pipeline_mode = #tpu.pipeline_mode<synchronous>, transform_indices = @transform_8, window_bounds = array<i64: 1, 784>}, {transform_indices = @transform_9, window_bounds = array<i64: 16, 784>}]} {
    %c0 = arith.constant 0 : index
    %c0_0 = arith.constant 0 : index
    %0 = vector.load %arg1[%c0, %c0_0] : memref<16x784xf32, #tpu.memory_space<vmem>>, vector<16x784xf32>
    %1 = arith.truncf %0 : vector<16x784xf32> to vector<16x784xbf16>
    %c0_1 = arith.constant 0 : index
    %c0_2 = arith.constant 0 : index
    %2 = vector.load %arg2[%c0_1, %c0_2] : memref<784x128xbf16, #tpu.memory_space<vmem>>, vector<784x128xbf16>
    %cst = arith.constant dense<0.000000e+00> : vector<16x128xf32>
    %3 = tpu.matmul %1, %2, %cst {dimension_numbers = #tpu.dot_dimension_numbers<[1], [0], [0], [1], [0, 0, 1, 1], [], []>} : vector<16x784xbf16>, vector<784x128xbf16>, vector<16x128xf32> -> vector<16x128xf32>
    %c0_3 = arith.constant 0 : index
    %c0_4 = arith.constant 0 : index
    %4 = vector.load %arg3[%c0_3, %c0_4] : memref<1x128xf32, #tpu.memory_space<vmem>>, vector<1x128xf32>
    %5 = vector.broadcast %4 : vector<1x128xf32> to vector<16x128xf32>
    %6 = arith.addf %3, %5 : vector<16x128xf32>
    %cst_5 = arith.constant 0.000000e+00 : f32
    %7 = vector.broadcast %cst_5 : f32 to vector<16x128xf32>
    %8 = arith.maximumf %6, %7 : vector<16x128xf32>
    %9 = arith.truncf %8 : vector<16x128xf32> to vector<16x128xbf16>
    %c0_6 = arith.constant 0 : index
    %c0_7 = arith.constant 0 : index
    %10 = vector.load %arg4[%c0_6, %c0_7] : memref<128x128xbf16, #tpu.memory_space<vmem>>, vector<128x128xbf16>
    %cst_8 = arith.constant dense<0.000000e+00> : vector<16x128xf32>
    %11 = tpu.matmul %9, %10, %cst_8 {dimension_numbers = #tpu.dot_dimension_numbers<[1], [0], [0], [1], [0, 0, 1, 1], [], []>} : vector<16x128xbf16>, vector<128x128xbf16>, vector<16x128xf32> -> vector<16x128xf32>
    %c0_9 = arith.constant 0 : index
    %c0_10 = arith.constant 0 : index
    %12 = vector.load %arg5[%c0_9, %c0_10] : memref<1x128xf32, #tpu.memory_space<vmem>>, vector<1x128xf32>
    %13 = vector.broadcast %12 : vector<1x128xf32> to vector<16x128xf32>
    %14 = arith.addf %11, %13 : vector<16x128xf32>
    %cst_11 = arith.constant 0.000000e+00 : f32
    %15 = vector.broadcast %cst_11 : f32 to vector<16x128xf32>
    %16 = arith.maximumf %14, %15 : vector<16x128xf32>
    %17 = arith.truncf %16 : vector<16x128xf32> to vector<16x128xbf16>
    %c0_12 = arith.constant 0 : index
    %c0_13 = arith.constant 0 : index
    %18 = vector.load %arg6[%c0_12, %c0_13] : memref<128x128xbf16, #tpu.memory_space<vmem>>, vector<128x128xbf16>
    %cst_14 = arith.constant dense<0.000000e+00> : vector<16x128xf32>
    %19 = tpu.matmul %17, %18, %cst_14 {dimension_numbers = #tpu.dot_dimension_numbers<[1], [0], [0], [1], [0, 0, 1, 1], [], []>} : vector<16x128xbf16>, vector<128x128xbf16>, vector<16x128xf32> -> vector<16x128xf32>
    %c0_15 = arith.constant 0 : index
    %c0_16 = arith.constant 0 : index
    %20 = vector.load %arg7[%c0_15, %c0_16] : memref<1x128xf32, #tpu.memory_space<vmem>>, vector<1x128xf32>
    %21 = vector.broadcast %20 : vector<1x128xf32> to vector<16x128xf32>
    %22 = arith.addf %19, %21 : vector<16x128xf32>
    %cst_17 = arith.constant 0.000000e+00 : f32
    %23 = vector.broadcast %cst_17 : f32 to vector<16x128xf32>
    %24 = arith.maximumf %22, %23 : vector<16x128xf32>
    %25 = arith.truncf %24 : vector<16x128xf32> to vector<16x128xbf16>
    %c0_18 = arith.constant 0 : index
    %c0_19 = arith.constant 0 : index
    %26 = vector.load %arg8[%c0_18, %c0_19] : memref<128x784xbf16, #tpu.memory_space<vmem>>, vector<128x784xbf16>
    %cst_20 = arith.constant dense<0.000000e+00> : vector<16x784xf32>
    %27 = tpu.matmul %25, %26, %cst_20 {dimension_numbers = #tpu.dot_dimension_numbers<[1], [0], [0], [1], [0, 0, 1, 1], [], []>} : vector<16x128xbf16>, vector<128x784xbf16>, vector<16x784xf32> -> vector<16x784xf32>
    %c0_21 = arith.constant 0 : index
    %c0_22 = arith.constant 0 : index
    %28 = vector.load %arg9[%c0_21, %c0_22] : memref<1x784xf32, #tpu.memory_space<vmem>>, vector<1x784xf32>
    %29 = vector.broadcast %28 : vector<1x784xf32> to vector<16x784xf32>
    %30 = arith.addf %27, %29 : vector<16x784xf32>
    %cst_23 = arith.constant 0.000000e+00 : f32
    %31 = vector.broadcast %cst_23 : f32 to vector<16x784xf32>
    %32 = arith.maximumf %30, %31 : vector<16x784xf32>
    %33 = arith.truncf %32 : vector<16x784xf32> to vector<16x784xbf16>
    %c0_24 = arith.constant 0 : index
    %c0_25 = arith.constant 0 : index
    %34 = vector.load %arg10[%c0_24, %c0_25] : memref<16x784xbf16, #tpu.memory_space<vmem>>, vector<16x784xbf16>
    tpu.vector_store %arg10[%c0_24, %c0_25], %33 {strides = array<i32>} : memref<16x784xbf16, #tpu.memory_space<vmem>>, vector<16x784xbf16>,
    return
  }
  func.func @transform_0(%arg0: i32) -> (i32, i32) {
    %c0_i32 = arith.constant 0 : i32
    %c0_i32_0 = arith.constant 0 : i32
    return %arg0, %c0_i32 : i32, i32
  }
  func.func @transform_1(%arg0: i32) -> (i32, i32) {
    %c0_i32 = arith.constant 0 : i32
    %c0_i32_0 = arith.constant 0 : i32
    %c0_i32_1 = arith.constant 0 : i32
    return %c0_i32, %c0_i32_0 : i32, i32
  }
  func.func @transform_2(%arg0: i32) -> (i32, i32) {
    %c0_i32 = arith.constant 0 : i32
    %c0_i32_0 = arith.constant 0 : i32
    %c0_i32_1 = arith.constant 0 : i32
    return %c0_i32, %c0_i32_0 : i32, i32
  }
  func.func @transform_3(%arg0: i32) -> (i32, i32) {
    %c0_i32 = arith.constant 0 : i32
    %c0_i32_0 = arith.constant 0 : i32
    %c0_i32_1 = arith.constant 0 : i32
    return %c0_i32, %c0_i32_0 : i32, i32
  }
  func.func @transform_4(%arg0: i32) -> (i32, i32) {
    %c0_i32 = arith.constant 0 : i32
    %c0_i32_0 = arith.constant 0 : i32
    %c0_i32_1 = arith.constant 0 : i32
    return %c0_i32, %c0_i32_0 : i32, i32
  }
  func.func @transform_5(%arg0: i32) -> (i32, i32) {
    %c0_i32 = arith.constant 0 : i32
    %c0_i32_0 = arith.constant 0 : i32
    %c0_i32_1 = arith.constant 0 : i32
    return %c0_i32, %c0_i32_0 : i32, i32
  }
  func.func @transform_6(%arg0: i32) -> (i32, i32) {
    %c0_i32 = arith.constant 0 : i32
    %c0_i32_0 = arith.constant 0 : i32
    %c0_i32_1 = arith.constant 0 : i32
    return %c0_i32, %c0_i32_0 : i32, i32
  }
  func.func @transform_7(%arg0: i32) -> (i32, i32) {
    %c0_i32 = arith.constant 0 : i32
    %c0_i32_0 = arith.constant 0 : i32
    %c0_i32_1 = arith.constant 0 : i32
    return %c0_i32, %c0_i32_0 : i32, i32
  }
  func.func @transform_8(%arg0: i32) -> (i32, i32) {
    %c0_i32 = arith.constant 0 : i32
    %c0_i32_0 = arith.constant 0 : i32
    %c0_i32_1 = arith.constant 0 : i32
    return %c0_i32, %c0_i32_0 : i32, i32
  }
  func.func @transform_9(%arg0: i32) -> (i32, i32) {
    %c0_i32 = arith.constant 0 : i32
    %c0_i32_0 = arith.constant 0 : i32
    return %arg0, %c0_i32 : i32, i32
  }
}

</mosaic_0001>

<bundles_post_ra>
// kernel: ae_forward.1
= control target key start
LH: loop header
LB: loop body
LE: loop exit
PB: predicated region body
PF: predicated region fallthrough
CT: control target
= control target key end

     0   :  { %14 = vsyncpa [#allocation3], 0  ;;  %s3027_s0 = inlined_call_operand.vmem [shape: f32[32,784], index: 0, kind: input, shape index: {}]   ;;  %s3028_s1 = inlined_call_operand.vmem [shape: bf16[784,128], index: 1, kind: input, shape index: {}]   ;;  %s3029_s2 = inlined_call_operand.vmem [shape: f32[1,128], index: 2, kind: input, shape index: {}]   ;;  %s3030_s3 = inlined_call_operand.vmem [shape: bf16[128,128], index: 3, kind: input, shape index: {}]   ;;  %s3031_s4 = inlined_call_operand.vmem [shape: f32[1,128], index: 4, kind: input, shape index: {}]   ;;  %s3032_s5 = inlined_call_operand.vmem [shape: bf16[128,128], index: 5, kind: input, shape index: {}]   ;;  %s3033_s6 = inlined_call_operand.vmem [shape: f32[1,128], index: 6, kind: input, shape index: {}]   ;;  %s3034_s7 = inlined_call_operand.vmem [shape: bf16[128,784], index: 7, kind: input, shape index: {}]   ;;  %s3035_s8 = inlined_call_operand.vmem [shape: f32[1,784], index: 8, kind: input, shape index: {}]   ;;  %s3036_s9 = inlined_call_operand.hbm [shape: bf16[32,784], index: 9, kind: output, shape index: {}]  }
   0x1   :  { %16 = vsyncpa [#allocation3 + $0x1], 0  ;;  %s2485_s30 = smov 0   ;;  %s2487_s10 = smov 0  }
   0x2   :  { %s2489_s11 = smov 0   ;;  %s2491_s12 = smov 0  }
   0x3 LB: > { %s2506_s13 = sadd.s32 4294967295, %s2427_s12   ;;  %s1862_s14 = sadd.s32 4294967294, %s2427_s12   ;;  %s2427_s12 = sphi %s2491_s12, %s3042_s12   ;;  %s2423_s11 = sphi %s2489_s11, %s3041_s11   ;;  %s2419_s10 = sphi %s2487_s10, %s3040_s10   ;;  %s2415_s30 = sphi %s2485_s30, %s3039_s30  }
   0x4   : > { %s2510_s15 = sadd.s32 1, %s2427_s12   ;;  %s223_s16 = sadd.s32 1, %s2423_s11 }
   0x5   : > { %s220_s17 = ssub.s32 %s2427_s12, %s2510_s15  ;;  %p233_p0 = scmp.ne.s32.totalorder %s2423_s11, %s2419_s10 }
   0x6   : > { %p221_p1 = scmp.eq.s32.totalorder %s220_s17, 0  ;;  %p234_p2 = scmp.eq.s32.totalorder %s2506_s13, 1 }
   0x7   : > { %p239_p3 = scmp.ne.s32.totalorder %s2419_s10, %s2415_s30  ;;  %p240_p4 = scmp.eq.s32.totalorder %s1862_s14, 1 }
   0x8   : > { %s2521_s18 = scalar_select %p221_p1, %s2423_s11, %s223_s16  }
   0x9   : > { %p2523_p5 = por %p234_p2, %p233_p0  ;;  %p2527_p6 = por %p240_p4, %p239_p3 }
   0xa   : > { %p1865_p7 = scmp.ge.s32.totalorder %s2427_s12, 1  ;;  %p292_p8 = scmp.lt.s32.totalorder %s2427_s12, 3 }
   0xc   : > { %p293_p9 = pnand %p1865_p7, %p292_p8 }
   0xd   : > { %s1866_s25 = sshll.u32 (!%p293_p9), %s2506_s13, 1  ;;  %s326_s14 = sand.u32 (!%p293_p9), 1, %s2419_s10  }
   0xe   : > { %296 = sbr.rel (%p293_p9) target bundleno = 950 (0x3b6), region = 56  ;;  %p330_p10 = scmp.lt.s32.totalorder (!%p293_p9), %s1866_s25, 3 }
   0xf   : > { %s2177_s17 = smul.u32 (!%p293_p9), 896, %s2506_s13  ;;  %s2987_s13 = scalar_lea.sflag (!%p293_p9), [#allocation3], %s326_s14 }
  0x10   : > { %s2432_s27 = smov (!%p293_p9), [#allocation2]  }
  0x11   : > { %s2978_s23 = scalar_lea.hbm (!%p293_p9), %s3036_s9, %s2177_s17  ;;  %s2371_s28 = sshll.u32 (!%p293_p9), %s2432_s27, 4  ;;  %s2372_s28 = int_to_ptr.vmem [resolvable:$false] %s2371_s28 }
  0x12   : > { %s2373_s29 = scalar_lea.vmem (!%p293_p9), %s2372_s28, 1792 }
  0x13   : > { %v2222_v0 = vld [vmem:[%s3028_s1 + $0x78] sm:$0xff]   ;;  %v2226_v4 = vld [vmem:[%s3028_s1 + $0x70] sm:$0xff]   ;;  %v2230_v8 = vld [vmem:[%s3028_s1 + $0x68] sm:$0xff]   ;;  %s3044_s25 = smov (!%p330_p10, %s1866_s25), 3  ;;  %v2429_v43 = vmov 0.0   ;;  %vm2430_vm0 = vmmov 0  }
  0x14   : > { %v2223_v1 = vld [vmem:[%s3028_s1 + $0x38] sm:$0xff]   ;;  %2014 = vmatprep.subr.bf16.mxu0 %v2222_v0  ;;  %v2227_v5 = vld [vmem:[%s3028_s1 + $0x30] sm:$0xff]   ;;  %v2231_v9 = vld [vmem:[%s3028_s1 + $0x28] sm:$0xff]   ;;  %s2176_s26 = smul.u32 56, %s3044_s25  ;;  %vm758_vm1 = vcmask 130048   ;;  %vm1779_vm2 = vcmask 125952  }
  0x15   : > { %v2224_v2 = vld [vmem:[%s3028_s1 + $0xf8] sm:$0xff]   ;;  %2015 = vmatpush3.bf16.msra.mxu0 %v2223_v1  ;;  %v2228_v6 = vld [vmem:[%s3028_s1 + $0xf0] sm:$0xff]   ;;  %v2232_v10 = vld [vmem:[%s3028_s1 + $0xe8] sm:$0xff]  }
  0x16   : > { %v2225_v3 = vld [vmem:[%s3028_s1 + $0xb8] sm:$0xff]   ;;  %2036 = vmatprep.subr.bf16.mxu1 %v2224_v2  ;;  %2016 = vmatprep.subr.bf16.mxu0 %v2226_v4  ;;  %v2229_v7 = vld [vmem:[%s3028_s1 + $0xb0] sm:$0xff]   ;;  %v2233_v11 = vld [vmem:[%s3028_s1 + $0xa8] sm:$0xff]   ;;  %s2624_s24 = scalar_lea.vmem %s3027_s0, %s2176_s26  ;;  %s2175_s26 = smul.u32 56, %s326_s14 }
  0x17   : > { %2037 = vmatpush3.bf16.msra.mxu1 %v2225_v3  ;;  %v2234_v12 = vld [vmem:[%s3028_s1 + $0x60] sm:$0xff]   ;;  %v2238_v16 = vld [vmem:[%s3028_s1 + $0x58] sm:$0xff]   ;;  %v2242_v20 = vld [vmem:[%s3028_s1 + $0x50] sm:$0xff]  }
  0x18   : > { %2038 = vmatprep.subr.bf16.mxu1 %v2228_v6  ;;  %v2235_v13 = vld [vmem:[%s3028_s1 + $0x20] sm:$0xff]   ;;  %v2239_v17 = vld [vmem:[%s3028_s1 + $0x18] sm:$0xff]   ;;  %v2243_v21 = vld [vmem:[%s3028_s1 + $0x10] sm:$0xff]   ;;  %s2964_s16 = scalar_lea.vmem [#allocation2], %s2175_s26 }
  0x19   : > { %2017 = vmatpush3.bf16.msra.mxu0 %v2227_v5  ;;  %v2236_v14 = vld [vmem:[%s3028_s1 + $0xe0] sm:$0xff]   ;;  %v2240_v18 = vld [vmem:[%s3028_s1 + $0xd8] sm:$0xff]   ;;  %v2244_v22 = vld [vmem:[%s3028_s1 + $0xd0] sm:$0xff]   ;;  %s1800_s21 = sshll.u32 %s2964_s16, 4  ;;  %s2980_s21 = int_to_ptr.vmem [resolvable:$true] %s1800_s21 }
  0x1a   : > { %2018 = vmatprep.subr.bf16.mxu0 %v2230_v8  ;;  %v2237_v15 = vld [vmem:[%s3028_s1 + $0xa0] sm:$0xff]   ;;  %v2241_v19 = vld [vmem:[%s3028_s1 + $0x98] sm:$0xff]   ;;  %v2245_v23 = vld [vmem:[%s3028_s1 + $0x90] sm:$0xff]   ;;  %p2374_p0 = scmp.lt.s32.totalorder %s2980_s21, %s2372_s28 }
  0x1b   : > { %2039 = vmatpush3.bf16.msra.mxu1 %v2229_v7  ;;  %v2246_v24 = vld [vmem:[%s3028_s1 + $0x48] sm:$0xff]   ;;  %v2250_v28 = vld [vmem:[%s3028_s1 + $0x40] sm:$0xff]   ;;  %v345_v36 = vld [vmem:[%s2624_s24 + $0x38] sm:$0xff] }
  0x1c   : > { %2040 = vmatprep.subr.bf16.mxu1 %v2232_v10  ;;  %v2247_v25 = vld [vmem:[%s3028_s1 + $0x8] sm:$0xff]   ;;  %v2251_v29 = vld [vmem:[%s3028_s1] sm:$0xff]   ;;  %v2254_v38 = vld [vmem:[%s3028_s1 + $0x178] sm:$0xff]  }
  0x1d   : > { %2019 = vmatpush3.bf16.msra.mxu0 %v2231_v9  ;;  %v2248_v26 = vld [vmem:[%s3028_s1 + $0xc8] sm:$0xff]   ;;  %v2252_v30 = vld [vmem:[%s3028_s1 + $0xc0] sm:$0xff]   ;;  %v341_v39 = vld [vmem:[%s2624_s24 + $0x18] sm:$0xff] }
  0x1e   : > { %2020 = vmatprep.subr.bf16.mxu0 %v2234_v12  ;;  %v2249_v27 = vld [vmem:[%s3028_s1 + $0x88] sm:$0xff]   ;;  %v346_v32 = vld [vmem:[%s2624_s24 + $0x40] sm:$0xff]  ;;  %v348_v40 = vld [vmem:[%s2624_s24 + $0x50] sm:$0xff] }
  0x1f   : > { %2041 = vmatpush3.bf16.msra.mxu1 %v2233_v11  ;;  %v339_v31 = vld [vmem:[%s2624_s24 + $0x8] sm:$0xff]  ;;  %v2253_v34 = vld [vmem:[%s3028_s1 + $0x80] sm:$0xff]   ;;  %v355_v41 = vpack.c.bf16 %v348_v40, %v341_v39  ;;  %v2255_v42 = vld [vmem:[%s3028_s1 + $0x138] sm:$0xff]  }
  0x20   : > { %2042 = vmatprep.subr.bf16.mxu1 %v2236_v14  ;;  %v353_v33 = vpack.c.bf16 %v346_v32, %v339_v31  ;;  %v338_v35 = vld [vmem:[%s2624_s24] sm:$0xff]  ;;  %v340_v44 = vld [vmem:[%s2624_s24 + $0x10] sm:$0xff]  ;;  %v347_v45 = vld [vmem:[%s2624_s24 + $0x48] sm:$0xff] }
  0x21   : > { %2021 = vmatpush3.bf16.msra.mxu0 %v2235_v13  ;;  %v352_v37 = vpack.c.bf16 %v345_v36, %v338_v35  ;;  %835 = vmatprep.mubr.bf16.mxu1 %v355_v41  ;;  %v354_v46 = vpack.c.bf16 %v347_v45, %v340_v44  ;;  %v2256_v47 = vld [vmem:[%s3028_s1 + $0x170] sm:$0xff]   ;;  %v2258_v49 = vld [vmem:[%s3028_s1 + $0x168] sm:$0xff]   ;;  %v2260_v51 = vld [vmem:[%s3028_s1 + $0x160] sm:$0xff]  }
  0x22   : > { %2022 = vmatprep.subr.bf16.mxu0 %v2238_v16  ;;  %794 = vmatprep.mubr.bf16.mxu0 %v353_v33  ;;  %v2257_v48 = vld [vmem:[%s3028_s1 + $0x130] sm:$0xff]   ;;  %v2259_v50 = vld [vmem:[%s3028_s1 + $0x128] sm:$0xff]   ;;  %v2261_v52 = vld [vmem:[%s3028_s1 + $0x120] sm:$0xff]  }
  0x23   : > { %2043 = vmatpush3.bf16.msra.mxu1 %v2237_v15  ;;  %v2262_v53 = vld [vmem:[%s3028_s1 + $0x158] sm:$0xff]   ;;  %v2264_v55 = vld [vmem:[%s3028_s1 + $0x150] sm:$0xff]   ;;  %v2270_v56 = vld [vmem:[%s3028_s1 + $0x180] sm:$0xff]  }
  0x24   : > { %2044 = vmatprep.subr.bf16.mxu1 %v2240_v18  ;;  %v2263_v54 = vld [vmem:[%s3028_s1 + $0x118] sm:$0xff]   ;;  %v343_v57 = vld [vmem:[%s2624_s24 + $0x28] sm:$0xff]  ;;  %v2265_v58 = vld [vmem:[%s3028_s1 + $0x110] sm:$0xff]  }
  0x25   : > { %2023 = vmatpush3.bf16.msra.mxu0 %v2239_v17  ;;  %v2266_v59 = vld [vmem:[%s3028_s1 + $0x148] sm:$0xff]   ;;  %v350_v60 = vld [vmem:[%s2624_s24 + $0x60] sm:$0xff]  ;;  %v344_v62 = vld [vmem:[%s2624_s24 + $0x30] sm:$0xff] }
  0x26   : > { %2024 = vmatprep.subr.bf16.mxu0 %v2242_v20  ;;  %v357_v61 = vpack.c.bf16 %v350_v60, %v343_v57  ;;  %v351_v63 = vld [vmem:[%s2624_s24 + $0x68] sm:$0xff]  ;;  %v2268_v2 = vld [vmem:[%s3028_s1 + $0x140] sm:$0xff]   ;;  %v349_v5 = vld [vmem:[%s2624_s24 + $0x58] sm:$0xff] }
  0x27   : > { %2045 = vmatpush3.bf16.msra.mxu1 %v2241_v19  ;;  %v358_v0 = vpack.c.bf16 %v351_v63, %v344_v62  ;;  %v2267_v1 = vld [vmem:[%s3028_s1 + $0x108] sm:$0xff]   ;;  %v2269_v3 = vld [vmem:[%s3028_s1 + $0x100] sm:$0xff]   ;;  %v2271_v7 = vld [vmem:[%s3030_s3 + $0x38] sm:$0xff]  }
  0x28   : > { %2046 = vmatprep.subr.bf16.mxu1 %v2244_v22  ;;  %v342_v4 = vld [vmem:[%s2624_s24 + $0x20] sm:$0xff]  ;;  %v2272_v8 = vld [vmem:[%s3030_s3 + $0x30] sm:$0xff]   ;;  %v2273_v9 = vld [vmem:[%s3030_s3 + $0x28] sm:$0xff]   ;;  %s2367_s24 = scalar_lea.vmem %s2980_s21, 896 }
  0x29   : > { %2025 = vmatpush3.bf16.msra.mxu0 %v2243_v21  ;;  %v356_v6 = vpack.c.bf16 %v349_v5, %v342_v4  ;;  %v2274_v10 = vld [vmem:[%s3030_s3 + $0x20] sm:$0xff]   ;;  %v2275_v11 = vld [vmem:[%s3030_s3 + $0x18] sm:$0xff]   ;;  %v2276_v12 = vld [vmem:[%s3030_s3 + $0x10] sm:$0xff]   ;;  %p2368_p11 = scmp.ne.s32.totalorder %s2980_s21, %s2367_s24  ;;  %p2375_p1 = scmp.lt.s32.totalorder %s2373_s29, %s2367_s24 }
  0x2a   : > { %2026 = vmatprep.subr.bf16.mxu0 %v2246_v24  ;;  %v2277_v13 = vld [vmem:[%s3030_s3 + $0x8] sm:$0xff]   ;;  %v2278_v14 = vld [vmem:[%s3030_s3] sm:$0xff]   ;;  %v2279_v15 = vld [vmem:[%s3032_s5 + $0x38] sm:$0xff]  }
  0x2b   : > { %2047 = vmatpush3.bf16.msra.mxu1 %v2245_v23  ;;  %v2280_v16 = vld [vmem:[%s3032_s5 + $0x30] sm:$0xff]   ;;  %v2281_v17 = vld [vmem:[%s3032_s5 + $0x28] sm:$0xff]   ;;  %v2282_v18 = vld [vmem:[%s3032_s5 + $0x20] sm:$0xff]   ;;  %p2369_p12 = pnand %p2368_p11, %p2523_p5  ;;  %p2376_p2 = por %p2375_p1, %p2374_p0 }
  0x2c   : > { %2048 = vmatprep.subr.bf16.mxu1 %v2248_v26  ;;  %v2283_v19 = vld [vmem:[%s3032_s5 + $0x18] sm:$0xff]   ;;  %v1868_v32 = vld [vmem:[%s3029_s2] ss:$0 sm:$0xff]  ;;  %v2292_v60 = vld [vmem:[%s3034_s7 + $0x194] ss:$28 sps:$4 sm:$0xff]  }
  0x2d   : > { %2027 = vmatpush3.bf16.msra.mxu0 %v2247_v25  ;;  %v2286_v57 = vld [vmem:[%s3032_s5] sm:$0xff]   ;;  %v2293_v62 = vld [vmem:[%s3034_s7 + $0x150] ss:$28 sps:$4 sm:$0xff]   ;;  %v2301_v63 = vld [vmem:[%s3034_s7 + $0x11c] ss:$28 sps:$4 sm:$0xff]   ;;  %p2370_p13 = pneg %p2369_p12 }
  0x2e   : > { %2028 = vmatprep.subr.bf16.mxu0 %v2250_v28  ;;  %v2311_v4 = vld [vmem:[%s3034_s7 + $0xa8] ss:$28 sps:$4 sm:$0xff]   ;;  %v2319_v5 = vld [vmem:[%s3034_s7 + $0x74] ss:$28 sps:$4 sm:$0xff]  }
  0x2f   : > { %2049 = vmatpush3.bf16.msra.mxu1 %v2249_v27  ;;  %p2377_p3 = pnand %p2376_p2, %p2370_p13 }
  0x30   : > { %2050 = vmatprep.subr.bf16.mxu1 %v2252_v30 }
  0x31   : > { %2029 = vmatpush3.bf16.msra.mxu0 %v2251_v29 }
  0x32   : > { %2058 = vmatprep.subr.bf16.mxu0 %v2254_v38 }
  0x33   : > { %2051 = vmatpush3.bf16.msra.mxu1 %v2253_v34 }
  0x34   : > { %2109 = vmatprep.subr.bf16.mxu1 %v2429_v43  ;;  %795 = vmatmul.mubr.bf16.vlgmr.msra.gmra.mxu0 %v352_v37 }
  0x35   : > { %2059 = vmatpush3.bf16.msra.mxu0 %v2255_v42  ;;  %876 = vmatprep.mubr.bf16.mxu0 %v357_v61  ;;  %v2295_v61 = vld [vmem:[%s3034_s7 + $0x154] ss:$28 sps:$4 sm:$0xff]  }
  0x36   : > { %836 = vmatmul.mubr.bf16.vlgmr.msra.gmra.mxu1 %v354_v46  ;;  %2060 = vmatprep.subr.bf16.mxu0 %v2256_v47 }
  0x37   : > { %2111 = vmatprep.mubr.msk.bf16.mxu1 %vm2430_vm0, %v2429_v43  ;;  %2110 = vmatpush3.bf16.msra.mxu1 %v2270_v56  ;;  %v2285_v56 = vld [vmem:[%s3032_s5 + $0x8] sm:$0xff]  }
  0x38   : > { %2115 = vmatprep.subr.bf16.mxu1 %v2429_v43 }
  0x39   : > { %2061 = vmatpush3.bf16.msra.mxu0 %v2257_v48 }
  0x3a   : > { %2062 = vmatprep.subr.bf16.mxu0 %v2258_v49 }
  0x3d   : > { %2063 = vmatpush3.bf16.msra.mxu0 %v2259_v50 }
  0x3e   : > { %2064 = vmatprep.subr.bf16.mxu0 %v2260_v51  ;;  %2112 = vmatmul.mubr.msk.bf16.vlgmr.msra.gmra.mxu1 %vm758_vm1, %v358_v0  ;;  %v2299_v0 = vld [vmem:[%s3034_s7 + $0x118] ss:$28 sps:$4 sm:$0xff]  }
  0x3f   : > { %2131 = vmatprep.mubr.msk.bf16.mxu1 %vm2430_vm0, %v2429_v43  ;;  %2116 = vmatpush3.bf16.msra.mxu1 %v2271_v7  ;;  %v1919_v7 = vld [vmem:[%s3031_s4] ss:$0 sm:$0xff] }
  0x40   : > { %2117 = vmatprep.subr.bf16.mxu1 %v2429_v43 }
  0x41   : > { %2065 = vmatpush3.bf16.msra.mxu0 %v2261_v52 }
  0x42   : > { %2066 = vmatprep.subr.bf16.mxu0 %v2262_v53 }
  0x43   : > { %2118 = vmatpush3.bf16.msra.mxu1 %v2272_v8 }
  0x44   : > { %2119 = vmatprep.subr.bf16.mxu1 %v2429_v43 }
  0x45   : > { %2067 = vmatpush3.bf16.msra.mxu0 %v2263_v54 }
  0x46   : > { %2068 = vmatprep.subr.bf16.mxu0 %v2264_v55  ;;  %v2284_v55 = vld [vmem:[%s3032_s5 + $0x10] sm:$0xff]  }
  0x47   : > { %2120 = vmatpush3.bf16.msra.mxu1 %v2273_v9 }
  0x48   : > { %2121 = vmatprep.subr.bf16.mxu1 %v2429_v43 }
  0x49   : > { %2069 = vmatpush3.bf16.msra.mxu0 %v2265_v58  ;;  %v2287_v58 = vld [vmem:[%s3034_s7 + $0x188] ss:$28 sps:$4 sm:$0xff]  }
  0x4a   : > { %2070 = vmatprep.subr.bf16.mxu0 %v2266_v59  ;;  %v2289_v59 = vld [vmem:[%s3034_s7 + $0x18c] ss:$28 sps:$4 sm:$0xff]  }
  0x4b   : > { %2122 = vmatpush3.bf16.msra.mxu1 %v2274_v10 }
  0x4c   : > { %2123 = vmatprep.subr.bf16.mxu1 %v2429_v43 }
  0x4d   : > { %2071 = vmatpush3.bf16.msra.mxu0 %v2267_v1  ;;  %v2307_v1 = vld [vmem:[%s3034_s7 + $0xe4] ss:$28 sps:$4 sm:$0xff]  }
  0x4e   : > { %2072 = vmatprep.subr.bf16.mxu0 %v2268_v2  ;;  %v2305_v2 = vld [vmem:[%s3034_s7 + $0xe0] ss:$28 sps:$4 sm:$0xff]  }
  0x4f   : > { %2124 = vmatpush3.bf16.msra.mxu1 %v2275_v11 }
  0x50   : > { %2125 = vmatprep.subr.bf16.mxu1 %v2429_v43 }
  0x51   : > { %2073 = vmatpush3.bf16.msra.mxu0 %v2269_v3  ;;  %v2313_v3 = vld [vmem:[%s3034_s7 + $0xac] ss:$28 sps:$4 sm:$0xff]  }
  0x52   : > { %2135 = vmatprep.subr.bf16.mxu0 %v2429_v43 }
  0x53   : > { %2126 = vmatpush3.bf16.msra.mxu1 %v2276_v12 }
  0x54   : > { %877 = vmatmul.mubr.bf16.vlgmr.msra.gmra.mxu0 %v356_v6  ;;  %2127 = vmatprep.subr.bf16.mxu1 %v2429_v43  ;;  %v2317_v6 = vld [vmem:[%s3034_s7 + $0x70] ss:$28 sps:$4 sm:$0xff]  }
  0x55   : > { %2151 = vmatprep.mubr.msk.bf16.mxu0 %vm2430_vm0, %v2429_v43  ;;  %2136 = vmatpush3.bf16.msra.mxu0 %v2279_v15 }
  0x56   : > { %2137 = vmatprep.subr.bf16.mxu0 %v2429_v43 }
  0x57   : > { %2128 = vmatpush3.bf16.msra.mxu1 %v2277_v13 }
  0x58   : > { %2129 = vmatprep.subr.bf16.mxu1 %v2429_v43 }
  0x59   : > { %2138 = vmatpush3.bf16.msra.mxu0 %v2280_v16  ;;  %v2290_v16 = vld [vmem:[%s3034_s7 + $0x190] ss:$28 sps:$4 sm:$0xff]  }
  0x5a   : > { %2139 = vmatprep.subr.bf16.mxu0 %v2429_v43 }
  0x5b   : > { %2130 = vmatpush3.bf16.msra.mxu1 %v2278_v14 }
  0x5c   : > { %1548 = vmatprep.subr.bf16.mxu1 %v2289_v59  ;;  %v2350_v59 = vld [vmem:[%s3034_s7 + $0xf8] ss:$28 sps:$4 sm:$0xff]  }
  0x5d   : > { %2140 = vmatpush3.bf16.msra.mxu0 %v2281_v17 }
  0x5e   : > { %2141 = vmatprep.subr.bf16.mxu0 %v2429_v43 }
  0x61   : > { %2142 = vmatpush3.bf16.msra.mxu0 %v2282_v18  ;;  %v2298_v18 = vld [vmem:[%s3034_s7 + $0x15c] ss:$28 sps:$4 sm:$0xff]  }
  0x62   : > { %2143 = vmatprep.subr.bf16.mxu0 %v2429_v43 }
  0x65   : > { %2144 = vmatpush3.bf16.msra.mxu0 %v2283_v19  ;;  %v2296_v19 = vld [vmem:[%s3034_s7 + $0x158] ss:$28 sps:$4 sm:$0xff]  }
  0x66   : > { %2145 = vmatprep.subr.bf16.mxu0 %v2429_v43 }
  0x69   : > { %2146 = vmatpush3.bf16.msra.mxu0 %v2284_v55  ;;  %v2343_v55 = vld [vmem:[%s3034_s7 + $0x128] ss:$28 sps:$4 sm:$0xff]  }
  0x6a   : > { %2147 = vmatprep.subr.bf16.mxu0 %v2429_v43 }
  0x6d   : > { %2148 = vmatpush3.bf16.msra.mxu0 %v2285_v56  ;;  %v2346_v56 = vld [vmem:[%s3034_s7 + $0x130] ss:$28 sps:$4 sm:$0xff]  }
  0x6e   : > { %2149 = vmatprep.subr.bf16.mxu0 %v2429_v43 }
  0x71   : > { %2150 = vmatpush3.bf16.msra.mxu0 %v2286_v57  ;;  %v2349_v57 = vld [vmem:[%s3034_s7 + $0xf4] ss:$28 sps:$4 sm:$0xff]  }
  0x72   : > { %1591 = vmatprep.subr.bf16.mxu0 %v2292_v60  ;;  %v2353_v60 = vld [vmem:[%s3034_s7 + $0xbc] ss:$28 sps:$4 sm:$0xff]  }
  0xf4   : > { %v2030_v23 = vpop.f32.mrf.mxu0 }
  0xf6   : > { %v2052_v20 = vpop.f32.mrf.mxu1  ;;  %v2031_v25 = vpop.f32.mrf.mxu0 }
  0xf7   : > { %v2032_v31 = vadd.f32 %v2031_v25, %v2030_v23  ;;  %v2308_v23 = vld [vmem:[%s3034_s7 + $0xe8] ss:$28 sps:$4 sm:$0xff]   ;;  %v2314_v25 = vld [vmem:[%s3034_s7 + $0xb0] ss:$28 sps:$4 sm:$0xff]  }
  0xf8   : > { %v2053_v21 = vpop.f32.mrf.mxu1  ;;  %v2033_v28 = vpop.f32.mrf.mxu0 }
  0xf9   : > { %v797_v34 = vadd.f32 %v2032_v31, %v1868_v32  ;;  %v2054_v35 = vadd.f32 %v2053_v21, %v2052_v20  ;;  %v2304_v20 = vld [vmem:[%s3034_s7 + $0x124] ss:$28 sps:$4 sm:$0xff]  }
  0xfa   : > { %v2055_v22 = vpop.f32.mrf.mxu1  ;;  %v2034_v33 = vpop.f32.mrf.mxu0  ;;  %v2302_v21 = vld [vmem:[%s3034_s7 + $0x120] ss:$28 sps:$4 sm:$0xff]  }
  0xfb   : > { %v2035_v36 = vadd.f32 %v2034_v33, %v2033_v28  ;;  %v838_v39 = vadd.f32 %v2054_v35, %v797_v34  ;;  %v2325_v28 = vld [vmem:[%s3034_s7 + $0x3c] ss:$28 sps:$4 sm:$0xff]   ;;  %v2334_v33 = vld [vmem:[%s3034_s7 + $0xc] ss:$28 sps:$4 sm:$0xff]  }
  0xfc   : > { %v2056_v24 = vpop.f32.mrf.mxu1  ;;  %v2326_v31 = vld [vmem:[%s3034_s7 + $0x40] ss:$28 sps:$4 sm:$0xff]   ;;  %v2332_v35 = vld [vmem:[%s3034_s7 + $0x8] ss:$28 sps:$4 sm:$0xff]  }
  0xfd   : > { %v800_v40 = vadd.f32 %v2035_v36, %v1868_v32  ;;  %v2057_v41 = vadd.f32 %v2056_v24, %v2055_v22  ;;  %v2310_v22 = vld [vmem:[%s3034_s7 + $0xec] ss:$28 sps:$4 sm:$0xff]   ;;  %v2316_v24 = vld [vmem:[%s3034_s7 + $0xb4] ss:$28 sps:$4 sm:$0xff]   ;;  %v2331_v32 = vld [vmem:[%s3034_s7 + $0x4] ss:$28 sps:$4 sm:$0xff]  }
  0xfe   : > { %v919_v26 = vpop.f32.mrf.mxu1  ;;  %v2329_v34 = vld [vmem:[%s3034_s7] ss:$28 sps:$4 sm:$0xff]  }
  0xff   : > { %v841_v47 = vadd.f32 %v2057_v41, %v800_v40  ;;  %v2337_v36 = vld [vmem:[%s3034_s7 + $0x19c] ss:$28 sps:$4 sm:$0xff]  }
 0x100   : > { %v2113_v27 = vpop.f32.mrf.mxu1 }
 0x101   : > { %v2320_v27 = vld [vmem:[%s3034_s7 + $0x78] ss:$28 sps:$4 sm:$0xff]  }
 0x102   : > { %v922_v29 = vpop.f32.mrf.mxu1 }
 0x104   : > { %v2114_v30 = vpop.f32.mrf.mxu1 }
 0x105   : > { %v2323_v30 = vld [vmem:[%s3034_s7 + $0x38] ss:$28 sps:$4 sm:$0xff]  }
 0x114   : > { %v2074_v37 = vpop.f32.mrf.mxu0 }
 0x116   : > { %v2075_v38 = vpop.f32.mrf.mxu0 }
 0x117   : > { %v2076_v42 = vadd.f32 %v2075_v38, %v2074_v37  ;;  %v2431_v37 = vmov 0   ;;  %v1928_v38 = vld [vmem:[%s3033_s6] ss:$0 sm:$0xff] }
 0x118   : > { %v2077_v44 = vpop.f32.mrf.mxu0 }
 0x119   : > { %v879_v45 = vadd.f32 %v2076_v42, %v838_v39 }
 0x11a   : > { %v2078_v46 = vpop.f32.mrf.mxu0 }
 0x11b   : > { %v2079_v48 = vadd.f32 %v2078_v46, %v2077_v44  ;;  %v920_v49 = vadd.f32 %v919_v26, %v879_v45  ;;  %v2322_v26 = vld [vmem:[%s3034_s7 + $0x7c] ss:$28 sps:$4 sm:$0xff]  }
 0x11d   : > { %v882_v50 = vadd.f32 %v2079_v48, %v841_v47  ;;  %v926_v52 = vmax.f32 %v920_v49, 0.0  ;;  %v2335_v48 = vld [vmem:[%s3034_s7 + $0x198] ss:$28 sps:$4 sm:$0xff]   ;;  %v2338_v49 = vld [vmem:[%s3034_s7 + $0x1a0] ss:$28 sps:$4 sm:$0xff]  }
 0x11f   : > { %v923_v51 = vadd.f32 %v922_v29, %v882_v50  ;;  %v2328_v29 = vld [vmem:[%s3034_s7 + $0x44] ss:$28 sps:$4 sm:$0xff]  }
 0x121   : > { %v927_v53 = vmax.f32 %v923_v51, 0.0  ;;  %v2341_v51 = vld [vmem:[%s3034_s7 + $0x164] ss:$28 sps:$4 sm:$0xff]  }
 0x123   : > { %v928_v54 = vpack.c.bf16 %v927_v53, %v926_v52  ;;  %v2339_v52 = vld [vmem:[%s3034_s7 + $0x160] ss:$28 sps:$4 sm:$0xff]   ;;  %v2342_v53 = vld [vmem:[%s3034_s7 + $0x168] ss:$28 sps:$4 sm:$0xff]  }
 0x125   : > { %2132 = vmatmul.mubr.bf16.vlgmr.msra.gmra.mxu1 %v928_v54  ;;  %v2345_v54 = vld [vmem:[%s3034_s7 + $0x12c] ss:$28 sps:$4 sm:$0xff]  }
 0x126   : > { %1549 = vmatpush1.bf16.msra.mxu1 %v2287_v58  ;;  %1580 = vmatprep.mubr.bf16.mxu1 %v2431_v37  ;;  %v2347_v58 = vld [vmem:[%s3034_s7 + $0xf0] ss:$28 sps:$4 sm:$0xff]  }
 0x127   : > { %1550 = vmatprep.subr.bf16.mxu1 %v2295_v61  ;;  %v2351_v61 = vld [vmem:[%s3034_s7 + $0xb8] ss:$28 sps:$4 sm:$0xff]  }
 0x12a   : > { %1551 = vmatpush1.bf16.msra.mxu1 %v2293_v62  ;;  %v2354_v62 = vld [vmem:[%s3034_s7 + $0xc0] ss:$28 sps:$4 sm:$0xff]  }
 0x12b   : > { %1552 = vmatprep.subr.bf16.mxu1 %v2301_v63  ;;  %v2357_v63 = vld [vmem:[%s3034_s7 + $0x84] ss:$28 sps:$4 sm:$0xff]  }
 0x12e   : > { %1553 = vmatpush1.bf16.msra.mxu1 %v2299_v0  ;;  %v2355_v0 = vld [vmem:[%s3034_s7 + $0x80] ss:$28 sps:$4 sm:$0xff]  }
 0x12f   : > { %1554 = vmatprep.subr.bf16.mxu1 %v2307_v1  ;;  %v2358_v1 = vld [vmem:[%s3034_s7 + $0x88] ss:$28 sps:$4 sm:$0xff]  }
 0x132   : > { %1555 = vmatpush1.bf16.msra.mxu1 %v2305_v2  ;;  %v2361_v2 = vld [vmem:[%s3034_s7 + $0x4c] ss:$28 sps:$4 sm:$0xff]  }
 0x133   : > { %1556 = vmatprep.subr.bf16.mxu1 %v2313_v3  ;;  %v2359_v3 = vld [vmem:[%s3034_s7 + $0x48] ss:$28 sps:$4 sm:$0xff]  }
 0x136   : > { %1557 = vmatpush1.bf16.msra.mxu1 %v2311_v4  ;;  %v2362_v4 = vld [vmem:[%s3034_s7 + $0x50] ss:$28 sps:$4 sm:$0xff]  }
 0x137   : > { %1558 = vmatprep.subr.bf16.mxu1 %v2319_v5  ;;  %v2365_v5 = vld [vmem:[%s3034_s7 + $0x14] ss:$28 sps:$4 sm:$0xff]  }
 0x13a   : > { %1559 = vmatpush1.bf16.msra.mxu1 %v2317_v6  ;;  %v2363_v6 = vld [vmem:[%s3034_s7 + $0x10] ss:$28 sps:$4 sm:$0xff]  }
 0x13b   : > { %1560 = vmatprep.subr.bf16.mxu1 %v2325_v28 }
 0x13e   : > { %1561 = vmatpush1.bf16.msra.mxu1 %v2323_v30 }
 0x13f   : > { %1562 = vmatprep.subr.bf16.mxu1 %v2331_v32 }
 0x142   : > { %1563 = vmatpush1.bf16.msra.mxu1 %v2329_v34 }
 0x143   : > { %1634 = vmatprep.subr.bf16.mxu1 %v2337_v36 }
 0x1e5   : > { %v1034_v8 = vpop.f32.mrf.mxu1 }
 0x1e6   : > { %v1035_v10 = vadd.f32 %v1919_v7, %v1034_v8  ;;  %v1225_v8 = vlaneseq }
 0x1e7   : > { %v2133_v9 = vpop.f32.mrf.mxu1 }
 0x1e8   : > { %v1041_v14 = vmax.f32 %v1035_v10, 0.0  ;;  %v1226_v9 = vshrl.u32 %v1225_v8, 7 }
 0x1e9   : > { %v1037_v11 = vpop.f32.mrf.mxu1 }
 0x1ea   : > { %v1038_v12 = vadd.f32 %v1919_v7, %v1037_v11  ;;  %v2366_v7 = vld [vmem:[%s3034_s7 + $0x18] ss:$28 sps:$4 sm:$0xff]   ;;  %v1227_v10 = vsub.s32 0, %v1226_v9  ;;  %v1235_v11 = vsub.s32 2, %v1226_v9 }
 0x1eb   : > { %v2134_v13 = vpop.f32.mrf.mxu1 }
 0x1ec   : > { %v1042_v15 = vmax.f32 %v1038_v12, 0.0  ;;  %v1223_v12 = vld [vmem:[%s3035_s8] sm:$0x7f]  ;;  %v1231_v13 = vsub.s32 1, %v1226_v9 }
 0x1ee   : > { %v1043_v17 = vpack.c.bf16 %v1042_v15, %v1041_v14  ;;  %v1239_v14 = vsub.s32 3, %v1226_v9  ;;  %v1228_v15 = vrot.slane %v1223_v12, %v1227_v10 }
 0x1f0   : > { %2152 = vmatmul.mubr.bf16.vlgmr.msra.gmra.mxu0 %v1043_v17  ;;  %v1232_v17 = vrot.slane %v1223_v12, %v1231_v13 }
 0x1f1   : > { %1592 = vmatpush1.bf16.msra.mxu0 %v2290_v16  ;;  %1623 = vmatprep.mubr.bf16.mxu0 %v2431_v37  ;;  %v1236_v16 = vrot.slane %v1223_v12, %v1235_v11 }
 0x1f2   : > { %1593 = vmatprep.subr.bf16.mxu0 %v2298_v18 }
 0x1f5   : > { %1594 = vmatpush1.bf16.msra.mxu0 %v2296_v19 }
 0x1f6   : > { %1595 = vmatprep.subr.bf16.mxu0 %v2304_v20 }
 0x1f9   : > { %1596 = vmatpush1.bf16.msra.mxu0 %v2302_v21 }
 0x1fa   : > { %1597 = vmatprep.subr.bf16.mxu0 %v2310_v22 }
 0x1fd   : > { %1598 = vmatpush1.bf16.msra.mxu0 %v2308_v23 }
 0x1fe   : > { %1599 = vmatprep.subr.bf16.mxu0 %v2316_v24 }
 0x201   : > { %1600 = vmatpush1.bf16.msra.mxu0 %v2314_v25 }
 0x202   : > { %1601 = vmatprep.subr.bf16.mxu0 %v2322_v26 }
 0x205   : > { %1602 = vmatpush1.bf16.msra.mxu0 %v2320_v27 }
 0x206   : > { %1603 = vmatprep.subr.bf16.mxu0 %v2328_v29 }
 0x209   : > { %1604 = vmatpush1.bf16.msra.mxu0 %v2326_v31 }
 0x20a   : > { %1605 = vmatprep.subr.bf16.mxu0 %v2334_v33 }
 0x20d   : > { %1606 = vmatpush1.bf16.msra.mxu0 %v2332_v35 }
 0x20e   : > { %2155 = vmatprep.subr.bf16.mxu0 %v2429_v43 }
 0x2b0   : > { %v1149_v39 = vpop.f32.mrf.mxu0 }
 0x2b1   : > { %v1150_v41 = vadd.f32 %v1928_v38, %v1149_v39 }
 0x2b2   : > { %v2153_v40 = vpop.f32.mrf.mxu0 }
 0x2b3   : > { %v1156_v46 = vmax.f32 %v1150_v41, 0.0 }
 0x2b4   : > { %v1152_v42 = vpop.f32.mrf.mxu0 }
 0x2b5   : > { %v1153_v44 = vadd.f32 %v1928_v38, %v1152_v42 }
 0x2b6   : > { %v2154_v45 = vpop.f32.mrf.mxu0 }
 0x2b7   : > { %v1157_v47 = vmax.f32 %v1153_v44, 0.0 }
 0x2b9   : > { %v1158_v50 = vpack.c.bf16 %v1157_v47, %v1156_v46  ;;  %v1243_v47 = vsub.s32 4, %v1226_v9 }
 0x2bb   : > { %1581 = vmatmul.mubr.bf16.vlgmr.msra.gmra.mxu1 %v1158_v50  ;;  %1624 = vmatmul.mubr.bf16.vlgmr.msra.gmra.mxu0 %v1158_v50 }
 0x2bc   : > { %1635 = vmatpush1.bf16.msra.mxu1 %v2335_v48  ;;  %2156 = vmatpush3.bf16.msra.mxu0 %v2338_v49  ;;  %v1251_v48 = vsub.s32 6, %v1226_v9  ;;  %v1247_v49 = vsub.s32 5, %v1226_v9 }
 0x2bd   : > { %1636 = vmatprep.subr.bf16.mxu1 %v2341_v51  ;;  %2157 = vmatprep.subr.bf16.mxu0 %v2429_v43 }
 0x2be   : > { %1666 = vmatprep.mubr.bf16.mxu1 %v2431_v37  ;;  %2171 = vmatprep.mubr.msk.bf16.mxu0 %vm2430_vm0, %v2429_v43  ;;  %v1252_v51 = vrot.slane %v1223_v12, %v1251_v48 }
 0x2c0   : > { %1637 = vmatpush1.bf16.msra.mxu1 %v2339_v52  ;;  %2158 = vmatpush3.bf16.msra.mxu0 %v2342_v53  ;;  %v1248_v52 = vrot.slane %v1223_v12, %v1247_v49 }
 0x2c1   : > { %1638 = vmatprep.subr.bf16.mxu1 %v2345_v54  ;;  %2159 = vmatprep.subr.bf16.mxu0 %v2429_v43 }
 0x2c4   : > { %1639 = vmatpush1.bf16.msra.mxu1 %v2343_v55  ;;  %2160 = vmatpush3.bf16.msra.mxu0 %v2346_v56 }
 0x2c5   : > { %1640 = vmatprep.subr.bf16.mxu1 %v2349_v57  ;;  %2161 = vmatprep.subr.bf16.mxu0 %v2429_v43 }
 0x2c8   : > { %1641 = vmatpush1.bf16.msra.mxu1 %v2347_v58  ;;  %2162 = vmatpush3.bf16.msra.mxu0 %v2350_v59 }
 0x2c9   : > { %1642 = vmatprep.subr.bf16.mxu1 %v2353_v60  ;;  %2163 = vmatprep.subr.bf16.mxu0 %v2429_v43 }
 0x2cc   : > { %1643 = vmatpush1.bf16.msra.mxu1 %v2351_v61  ;;  %2164 = vmatpush3.bf16.msra.mxu0 %v2354_v62 }
 0x2cd   : > { %1644 = vmatprep.subr.bf16.mxu1 %v2357_v63  ;;  %2165 = vmatprep.subr.bf16.mxu0 %v2429_v43 }
 0x2d0   : > { %1645 = vmatpush1.bf16.msra.mxu1 %v2355_v0  ;;  %2166 = vmatpush3.bf16.msra.mxu0 %v2358_v1 }
 0x2d1   : > { %1646 = vmatprep.subr.bf16.mxu1 %v2361_v2  ;;  %2167 = vmatprep.subr.bf16.mxu0 %v2429_v43 }
 0x2d4   : > { %1647 = vmatpush1.bf16.msra.mxu1 %v2359_v3  ;;  %2168 = vmatpush3.bf16.msra.mxu0 %v2362_v4 }
 0x2d5   : > { %1648 = vmatprep.subr.bf16.mxu1 %v2365_v5  ;;  %2169 = vmatprep.subr.bf16.mxu0 %v2429_v43  ;;  %v1240_v43 = vrot.slane %v1223_v12, %v1239_v14 }
 0x2d8   : > { %1649 = vmatpush1.bf16.msra.mxu1 %v2363_v6  ;;  %2170 = vmatpush3.bf16.msra.mxu0 %v2366_v7 }
 0x2db   : > { %1667 = vmatmul.mubr.bf16.vlgmr.msra.gmra.mxu1 %v1158_v50  ;;  %2172 = vmatmul.mubr.bf16.vlgmr.msra.gmra.mxu0 %v1158_v50  ;;  %v1244_v50 = vrot.slane %v1223_v12, %v1243_v47 }
 0x37b   : > { %v1582_v18 = vpop.f32.mrf.mxu1  ;;  %v1625_v19 = vpop.f32.mrf.mxu0 }
 0x37c   : > { %v1583_v20 = vadd.f32 %v1582_v18, %v1228_v15  ;;  %v1626_v21 = vadd.f32 %v1625_v19, %v1236_v16 }
 0x37d   : > { %v1584_v22 = vpop.f32.mrf.mxu1  ;;  %v1627_v23 = vpop.f32.mrf.mxu0 }
 0x37e   : > { %v1585_v24 = vadd.f32 %v1584_v22, %v1232_v17  ;;  %v1628_v25 = vadd.f32 %v1627_v23, %v1240_v43  ;;  %v1718_v28 = vmax.f32 %v1583_v20, 0.0  ;;  %v1720_v29 = vmax.f32 %v1626_v21, 0.0 }
 0x37f   : > { %v1586_v26 = vpop.f32.mrf.mxu1  ;;  %v1629_v27 = vpop.f32.mrf.mxu0 }
 0x380   : > { %v1719_v30 = vmax.f32 %v1585_v24, 0.0  ;;  %v1721_v31 = vmax.f32 %v1628_v25, 0.0  ;;  %v1587_v32 = vadd.f32 %v1586_v26, %v1228_v15  ;;  %v1630_v33 = vadd.f32 %v1629_v27, %v1236_v16 }
 0x381   : > { %v1588_v34 = vpop.f32.mrf.mxu1  ;;  %v1631_v35 = vpop.f32.mrf.mxu0 }
 0x382   : > { %v2006_v36 = vpack.c.bf16 %v1719_v30, %v1718_v28  ;;  %v2007_v37 = vpack.c.bf16 %v1721_v31, %v1720_v29  ;;  %v1589_v38 = vadd.f32 %v1588_v34, %v1232_v17  ;;  %v1632_v39 = vadd.f32 %v1631_v35, %v1240_v43 }
 0x383   : > { %v1725_v40 = vmax.f32 %v1587_v32, 0.0  ;;  %v1727_v41 = vmax.f32 %v1630_v33, 0.0 }
 0x384   : > { %1776 = vst [vmem:[%s2964_s16] sm:$0xff] %v2006_v36  ;;  %1777 = vst [vmem:[%s2964_s16 + $0x8] sm:$0xff] %v2007_v37  ;;  %v1726_v42 = vmax.f32 %v1589_v38, 0.0  ;;  %v1728_v44 = vmax.f32 %v1632_v39, 0.0 }
 0x386   : > { %v2010_v45 = vpack.c.bf16 %v1726_v42, %v1725_v40  ;;  %v2011_v46 = vpack.c.bf16 %v1728_v44, %v1727_v41 }
 0x388   : > { %1781 = vst [vmem:[%s2964_s16 + $0x1c] sm:$0xff] %v2010_v45  ;;  %1782 = vst [vmem:[%s2964_s16 + $0x24] sm:$0xff] %v2011_v46 }
 0x39b   : > { %v1668_v53 = vpop.f32.mrf.mxu1  ;;  %v1711_v54 = vpop.f32.mrf.mxu0 }
 0x39c   : > { %v1669_v55 = vadd.f32 %v1668_v53, %v1244_v50  ;;  %v1712_v56 = vadd.f32 %v1711_v54, %v1252_v51 }
 0x39d   : > { %v1670_v57 = vpop.f32.mrf.mxu1  ;;  %v2173_v58 = vpop.f32.mrf.mxu0 }
 0x39e   : > { %v1724_v59 = vmax.f32 %v1712_v56, 0.0  ;;  %v1671_v60 = vadd.f32 %v1670_v57, %v1248_v52  ;;  %v1722_v61 = vmax.f32 %v1669_v55, 0.0 }
 0x39f   : > { %v1672_v62 = vpop.f32.mrf.mxu1  ;;  %v1714_v63 = vpop.f32.mrf.mxu0 }
 0x3a0   : > { %v2009_v0 = vpack.c.bf16 %v1724_v59, %v1724_v59  ;;  %v1723_v1 = vmax.f32 %v1671_v60, 0.0  ;;  %v1673_v2 = vadd.f32 %v1672_v62, %v1244_v50  ;;  %v1715_v3 = vadd.f32 %v1714_v63, %v1252_v51 }
 0x3a1   : > { %v1674_v4 = vpop.f32.mrf.mxu1  ;;  %v2174_v5 = vpop.f32.mrf.mxu0 }
 0x3a2   : > { %1780 = vst.msk [vmem:[%s2964_s16 + $0x18] sm:$0xf] %vm1779_vm2, %v2009_v0  ;;  %v2008_v6 = vpack.c.bf16 %v1723_v1, %v1722_v61  ;;  %v1731_v7 = vmax.f32 %v1715_v3, 0.0  ;;  %v1675_v8 = vadd.f32 %v1674_v4, %v1248_v52  ;;  %v1729_v9 = vmax.f32 %v1673_v2, 0.0 }
 0x3a4   : > { %1778 = vst [vmem:[%s2964_s16 + $0x10] sm:$0xff] %v2008_v6  ;;  %v2013_v10 = vpack.c.bf16 %v1731_v7, %v1731_v7  ;;  %v1730_v11 = vmax.f32 %v1675_v8, 0.0 }
 0x3a6   : > { %1784 = vst.msk [vmem:[%s2964_s16 + $0x34] sm:$0xf] %vm1779_vm2, %v2013_v10  ;;  %v2012_v12 = vpack.c.bf16 %v1730_v11, %v1729_v9 }
 0x3a8   : > { %1783 = vst [vmem:[%s2964_s16 + $0x2c] sm:$0xff] %v2012_v12 }
 0x3a9   : > { %2380 = shalt.err (!%p2377_p3)
}
 0x3aa   : > { %s2381_s14 = scalar_lea.hbm %s2978_s23, 896  ;;  %s2385_s17 = scalar_lea.hbm %s3036_s9, 1792 }
 0x3ab   : > { %p2382_p4 = scmp.ne.s32.totalorder %s2978_s23, %s2381_s14  ;;  %p2386_p9 = scmp.lt.s32.totalorder %s2978_s23, %s3036_s9 }
 0x3ac   : > { %p2387_p10 = scmp.lt.s32.totalorder %s2385_s17, %s2381_s14 }
 0x3ad   : > { %p2383_p7 = pnand %p2382_p4, %p2523_p5 }
 0x3ae   : > { %p2388_p11 = por %p2387_p10, %p2386_p9 }
 0x3af   : > { %p2384_p8 = pneg %p2383_p7 }
 0x3b1   : > { %p2389_p12 = pnand %p2388_p11, %p2384_p8 }
 0x3b3   : > { %2392 = shalt.err (!%p2389_p12)
}
 0x3b4   : > { %s2433_s24 = smov 448   ;;  %s2434_s27 = smov 28  }
 0x3b5   : > { %2178 = dma.vmem_to_hbm [thread:$0]  (%p2523_p5), %s2980_s21, 896, %s2978_s23, %s2987_s13, %s2433_s24, %s2433_s24, %s2434_s27  }
 0x3b6 PF: > { %p2184_p13 = scmp.ge.s32.totalorder %s2427_s12, 2  ;;  %s1815_s28 = sand.u32 1, %s2415_s30  }
 0x3b7   : > { %s1816_s29 = scalar_lea.sflag [#allocation3], %s1815_s28 }
 0x3b8   : > { %p2181_p0 = pnand %p2184_p13, %p2527_p6 }
 0x3ba   : > { %p2182_p1 = pneg %p2181_p0 }
 0x3bc   : > { %2410 = dma.done.wait (%p2182_p1), %s1816_s29, 896  }
 0x3bd   : > { %2412 = vsyncadd (%p2182_p1), %s1816_s29, 4294966400  ;;  %p19_p2 = scmp.ge.s32.totalorder %s2510_s15, 4   ;;  %s3039_s30 = smov %s2419_s10 }
 0x3be   : > { %s3040_s10 = smov %s2423_s11  ;;  %s3041_s11 = smov %s2521_s18 }
 0x3bf   : > { %s3042_s12 = smov %s2510_s15  ;;  %21 = sbr.rel (!%p19_p2) target bundleno = 3 (0x3), region = 91 }
 0x3c4   :  { %1821 = vsyncpa [#allocation3], 1 }
 0x3c5   :  { %1823 = vsyncpa [#allocation3 + $0x1], 1 }

</bundles_post_ra>
